<compile_context>
chip_gen: v5e
topology: v5e:2x2
jax: 0.10.0
libtpu: 0.0.40
codegen_flags: <defaults>
</compile_context>

<pallas_src>
import functools

import jax
import jax.numpy as jnp
from jax.experimental import pallas as pl
from jax.experimental.pallas import tpu as pltpu


def _round_up(v, m):
    return (v + m - 1) // m * m


def _lora_kernel(x_ref, l_ref, r_ref, o_ref, *, scaling):
    # x_ref/o_ref: (tm, tn) streamed tiles of X / output.
    # l_ref: (tm, rank) left factor tile  (re-fetched only when row block changes).
    # r_ref: (rank, tn) right factor tile (re-fetched per column block; tiny).
    left = l_ref[...].astype(jnp.float32) * scaling      # scale the small factor
    right = r_ref[...].astype(jnp.float32)
    delta = jnp.dot(left, right, preferred_element_type=jnp.float32)
    o_ref[...] = (x_ref[...].astype(jnp.float32) + delta).astype(o_ref.dtype)


def _lora_apply(x, left, right, *, scaling, max_tm=512, max_tn=2048):
    """x + (left @ right) * scaling, streamed through VMEM in Pallas."""
    m, n = x.shape
    assert left.shape[0] == m and right.shape[1] == n
    rank = left.shape[1]
    assert right.shape[0] == rank

    # ---- Tile selection: lane-dense tiles, as big as the VMEM budget allows. --
    if n <= max_tn:
        tn = n                                        # full extent: always legal
    else:
        tn = max(128, (max_tn // 128) * 128)          # multiple of 128
    grid_j = int(pl.cdiv(n, tn))

    xo_budget = 16 << 20                              # X + O, double-buffered
    bytes_per_row = 4 * _round_up(tn, 128) * x.dtype.itemsize
    tm = min(max_tm, m, max(8, xo_budget // bytes_per_row))
    if tm < m:
        tm = max(8, (tm // 8) * 8)                    # aligned partial edge blocks
    grid_i = int(pl.cdiv(m, tm))

    # ---- VMEM budget (double-buffered tiles + small factor blocks + headroom).
    xo_bytes = 4 * _round_up(tm, 8) * _round_up(tn, 128) * x.dtype.itemsize
    l_bytes = 2 * _round_up(tm, 8) * 128 * left.dtype.itemsize
    r_bytes = 2 * _round_up(rank, 8) * _round_up(tn, 128) * right.dtype.itemsize
    vmem_limit = int(min(60 << 20,
                         max(32 << 20, xo_bytes + l_bytes + r_bytes + (8 << 20))))

    kernel = functools.partial(_lora_kernel, scaling=float(scaling))

    return pl.pallas_call(
        kernel,
        out_shape=jax.ShapeDtypeStruct((m, n), x.dtype),
        grid_spec=pltpu.PrefetchScalarGridSpec(
            num_scalar_prefetch=0,
            grid=(grid_i, grid_j),
            in_specs=[
                pl.BlockSpec((tm, tn), lambda i, j: (i, j)),     # X tile (streamed)
                pl.BlockSpec((tm, rank), lambda i, j: (i, 0)),   # left  factor
                pl.BlockSpec((rank, tn), lambda i, j: (0, j)),   # right factor
            ],
            out_specs=pl.BlockSpec((tm, tn), lambda i, j: (i, j)),
        ),
        compiler_params=pltpu.CompilerParams(
            dimension_semantics=("parallel", "parallel"),
            vmem_limit_bytes=vmem_limit,
        ),
    )(x, left, right)


def lora_forward(x, lora_b, lora_a, *, lora_alpha=8, rank=None,
                 fan_in_fan_out=False, max_tm=512, max_tn=2048):
    """Pallas equivalent of LoRAParametrization.lora_forward (dropout_p=0).

    fan_in_fan_out=False: x (fan_out, fan_in), lora_b (fan_out, rank),
                          lora_a (rank, fan_in); delta = lora_b @ lora_a.
    fan_in_fan_out=True : x (fan_in, fan_out), lora_a (fan_in, rank),
                          lora_b (rank, fan_out); delta = lora_a @ lora_b.
    """
    if fan_in_fan_out:
        left, right = lora_a, lora_b
    else:
        left, right = lora_b, lora_a
    if rank is None:
        rank = left.shape[1]
    scaling = float(lora_alpha) / float(rank)
    return _lora_apply(x, left, right, scaling=scaling,
                       max_tm=max_tm, max_tn=max_tn)


if __name__ == "__main__":
    import math

    rank, lora_alpha = 4, 8
    scaling = lora_alpha / rank
    key = jax.random.PRNGKey(0)

    test_cases = [
        # Small linear-layer weight; default caps -> single full-extent block.
        dict(fan_out=256, fan_in=512, max_tm=512, max_tn=2048, swap=False),
        # Non-divisible shape with small forced tiles: exercises the cdiv grid
        # and ragged edge blocks on both axes.
        dict(fan_out=200, fan_in=320, max_tm=64, max_tn=128, swap=False),
        # Embedding-style (fan_in_fan_out=True) operand swap.
        dict(fan_out=192, fan_in=160, max_tm=512, max_tn=2048, swap=True),
    ]

    for cfg in test_cases:
        fan_out, fan_in = cfg["fan_out"], cfg["fan_in"]
        key, k_x, k_a, k_b = jax.random.split(key, 4)

        if not cfg["swap"]:
            # Base weight X (the parametrized tensor torch passes as forward(X)).
            x = jax.random.normal(k_x, (fan_out, fan_in), dtype=jnp.float32)
            # lora_A: kaiming_uniform_(a=sqrt(5)) => U(-1/sqrt(fan_in), 1/sqrt(fan_in)).
            bound_a = 1.0 / math.sqrt(fan_in)
            lora_a = jax.random.uniform(k_a, (rank, fan_in), dtype=jnp.float32,
                                        minval=-bound_a, maxval=bound_a)
            # torch initializes lora_B to zeros; use small values so the low-rank
            # update path is exercised numerically.
            lora_b = 0.01 * jax.random.normal(k_b, (fan_out, rank), dtype=jnp.float32)
            ref = x + (lora_b @ lora_a) * scaling
        else:
            x = jax.random.normal(k_x, (fan_in, fan_out), dtype=jnp.float32)
            bound_a = 1.0 / math.sqrt(fan_in)
            lora_a = jax.random.uniform(k_a, (fan_in, rank), dtype=jnp.float32,
                                        minval=-bound_a, maxval=bound_a)
            lora_b = 0.01 * jax.random.normal(k_b, (rank, fan_out), dtype=jnp.float32)
            ref = x + (lora_a @ lora_b) * scaling

        out = lora_forward(x, lora_b, lora_a, lora_alpha=lora_alpha, rank=rank,
                           fan_in_fan_out=cfg["swap"],
                           max_tm=cfg["max_tm"], max_tn=cfg["max_tn"])
        out = jax.block_until_ready(out)

        assert out.shape == x.shape and out.dtype == x.dtype
        assert jnp.allclose(out, ref, atol=1e-5, rtol=1e-5), cfg

    print("KERNEL_OK")
</pallas_src>

<mosaic_0001>
module attributes {stable_mosaic.version = 11 : i64} {
  func.func @_lora_kernel(%arg0: i32, %arg1: i32, %arg2: memref<256x512xf32, #tpu.memory_space<vmem>>, %arg3: memref<256x4xf32, #tpu.memory_space<vmem>>, %arg4: memref<4x512xf32, #tpu.memory_space<vmem>>, %arg5: memref<256x512xf32, #tpu.memory_space<vmem>>) attributes {dimension_semantics = [#tpu.dimension_semantics<parallel>, #tpu.dimension_semantics<parallel>], iteration_bounds = array<i64: 1, 1>, scalar_prefetch = 0 : i64, scratch_operands = 0 : i64, tpu.core_type = #tpu.core_type<tc>, window_params = [{transform_indices = @transform_0, window_bounds = array<i64: 256, 512>}, {transform_indices = @transform_1, window_bounds = array<i64: 256, 4>}, {transform_indices = @transform_2, window_bounds = array<i64: 4, 512>}, {transform_indices = @transform_3, window_bounds = array<i64: 256, 512>}]} {
    %c0 = arith.constant 0 : index
    %c0_0 = arith.constant 0 : index
    %0 = vector.load %arg3[%c0, %c0_0] : memref<256x4xf32, #tpu.memory_space<vmem>>, vector<256x4xf32>
    %cst = arith.constant 2.000000e+00 : f32
    %1 = vector.broadcast %cst : f32 to vector<256x4xf32>
    %2 = arith.mulf %0, %1 : vector<256x4xf32>
    %c0_1 = arith.constant 0 : index
    %c0_2 = arith.constant 0 : index
    %3 = vector.load %arg4[%c0_1, %c0_2] : memref<4x512xf32, #tpu.memory_space<vmem>>, vector<4x512xf32>
    %cst_3 = arith.constant dense<0.000000e+00> : vector<256x512xf32>
    %4 = tpu.matmul %2, %3, %cst_3 {dimension_numbers = #tpu.dot_dimension_numbers<[1], [0], [0], [1], [0, 0, 1, 1], [], []>} : vector<256x4xf32>, vector<4x512xf32>, vector<256x512xf32> -> vector<256x512xf32>
    %c0_4 = arith.constant 0 : index
    %c0_5 = arith.constant 0 : index
    %5 = vector.load %arg2[%c0_4, %c0_5] : memref<256x512xf32, #tpu.memory_space<vmem>>, vector<256x512xf32>
    %6 = arith.addf %5, %4 : vector<256x512xf32>
    %c0_6 = arith.constant 0 : index
    %c0_7 = arith.constant 0 : index
    %7 = vector.load %arg5[%c0_6, %c0_7] : memref<256x512xf32, #tpu.memory_space<vmem>>, vector<256x512xf32>
    tpu.vector_store %arg5[%c0_6, %c0_7], %6 {strides = array<i32>} : memref<256x512xf32, #tpu.memory_space<vmem>>, vector<256x512xf32>,
    return
  }
  func.func @transform_0(%arg0: i32, %arg1: i32) -> (i32, i32) {
    %c0_i32 = arith.constant 0 : i32
    return %arg0, %arg1 : i32, i32
  }
  func.func @transform_1(%arg0: i32, %arg1: i32) -> (i32, i32) {
    %c0_i32 = arith.constant 0 : i32
    %c0_i32_0 = arith.constant 0 : i32
    return %arg0, %c0_i32 : i32, i32
  }
  func.func @transform_2(%arg0: i32, %arg1: i32) -> (i32, i32) {
    %c0_i32 = arith.constant 0 : i32
    %c0_i32_0 = arith.constant 0 : i32
    return %c0_i32, %arg1 : i32, i32
  }
  func.func @transform_3(%arg0: i32, %arg1: i32) -> (i32, i32) {
    %c0_i32 = arith.constant 0 : i32
    return %arg0, %arg1 : i32, i32
  }
}

</mosaic_0001>

<bundles_post_ra>
// kernel: tpu_custom_call.1
= control target key start
LH: loop header
LB: loop body
LE: loop exit
PB: predicated region body
PF: predicated region fallthrough
CT: control target
= control target key end

     0   :  { %8 = vsyncpa [#allocation3], 0  ;;  %s1521_s0 = inlined_call_operand.hbm [shape: f32[256,512], index: 0, kind: input, shape index: {}]   ;;  %s1522_s1 = inlined_call_operand.vmem [shape: f32[256,4], index: 1, kind: input, shape index: {}]   ;;  %s1523_s2 = inlined_call_operand.vmem [shape: f32[4,512], index: 2, kind: input, shape index: {}]   ;;  %s1524_s3 = inlined_call_operand.hbm [shape: f32[256,512], index: 3, kind: output, shape index: {}]  }
   0x1   :  { %9 = vsyncpa [#allocation4], 0  ;;  %s14_s14 = sshll.u32 %s1521_s0, 4  ;;  %s1255_s15 = smov [#allocation2]   ;;  %s15_s14 = int_to_ptr.hbm [resolvable:$true] %s14_s14 }
   0x2   :  { %s16_s16 = sshll.u32 %s1255_s15, 4  ;;  %s1256_s17 = smov 512   ;;  %s17_s16 = int_to_ptr.vmem [resolvable:$true] %s16_s16 }
   0x3   :  { %s1257_s18 = smov 32  }
   0x4   :  { %22 = dma.hbm_to_vmem [thread:$0]  %s15_s14, 16384, %s17_s16, [#allocation3], %s1256_s17, %s1256_s17, %s1257_s18  }
   0x5   :  { %1251 = dma.done.wait [#allocation3], 16384  }
   0x6   :  { %1252 = vsyncadd [#allocation3], 4294950912  ;;  %v96_v0 = vld [vmem:[%s1523_s2 + $0x8] sm:$0xff]  ;;  %v95_v1 = vld [vmem:[%s1523_s2] sm:$0xff]  ;;  %vm203_vm0 = vcmask 1043456   ;;  %vm106_vm1 = vcmask 31744  }
   0x7   :  { %101 = vst [vmem:[#allocation1 + $0x10] ss:$2 sm:$0xff] %v96_v0  ;;  %v31_v2 = vld [vmem:[%s1522_s1] sm:$0xff]  ;;  %v32_v8 = vld [vmem:[%s1522_s1 + $0x8] sm:$0xff]  ;;  %v33_v10 = vld [vmem:[%s1522_s1 + $0x10] sm:$0xff]  ;;  %s1054_s7 = sshll.u32 %s1524_s3, 4  ;;  %s1055_s7 = int_to_ptr.hbm [resolvable:$true] %s1054_s7 }
   0x8   :  { %99 = vst [vmem:[#allocation1] ss:$2 sm:$0xff] %v95_v1  ;;  %v63_v3 = vmul.f32 2.0, %v31_v2  ;;  %v64_v9 = vmul.f32 2.0, %v32_v8  ;;  %v65_v11 = vmul.f32 2.0, %v33_v10  ;;  %v34_v12 = vld [vmem:[%s1522_s1 + $0x18] sm:$0xff] }
   0x9   :  { %v66_v13 = vmul.f32 2.0, %v34_v12  ;;  %v35_v14 = vld [vmem:[%s1522_s1 + $0x20] sm:$0xff]  ;;  %v36_v16 = vld [vmem:[%s1522_s1 + $0x28] sm:$0xff]  ;;  %v37_v18 = vld [vmem:[%s1522_s1 + $0x30] sm:$0xff] }
   0xa   :  { %v67_v15 = vmul.f32 2.0, %v35_v14  ;;  %v68_v17 = vmul.f32 2.0, %v36_v16  ;;  %v69_v19 = vmul.f32 2.0, %v37_v18  ;;  %v38_v20 = vld [vmem:[%s1522_s1 + $0x38] sm:$0xff]  ;;  %v39_v22 = vld [vmem:[%s1522_s1 + $0x40] sm:$0xff]  ;;  %v40_v24 = vld [vmem:[%s1522_s1 + $0x48] sm:$0xff] }
   0xb   :  { %v70_v21 = vmul.f32 2.0, %v38_v20  ;;  %v71_v23 = vmul.f32 2.0, %v39_v22  ;;  %v72_v25 = vmul.f32 2.0, %v40_v24  ;;  %v41_v26 = vld [vmem:[%s1522_s1 + $0x50] sm:$0xff]  ;;  %v42_v28 = vld [vmem:[%s1522_s1 + $0x58] sm:$0xff]  ;;  %v43_v30 = vld [vmem:[%s1522_s1 + $0x60] sm:$0xff] }
   0xc   :  { %v73_v27 = vmul.f32 2.0, %v41_v26  ;;  %v74_v29 = vmul.f32 2.0, %v42_v28  ;;  %v75_v31 = vmul.f32 2.0, %v43_v30  ;;  %v44_v32 = vld [vmem:[%s1522_s1 + $0x68] sm:$0xff]  ;;  %v45_v34 = vld [vmem:[%s1522_s1 + $0x70] sm:$0xff]  ;;  %v46_v36 = vld [vmem:[%s1522_s1 + $0x78] sm:$0xff] }
   0xd   :  { %v76_v33 = vmul.f32 2.0, %v44_v32  ;;  %v77_v35 = vmul.f32 2.0, %v45_v34  ;;  %v78_v37 = vmul.f32 2.0, %v46_v36  ;;  %v47_v38 = vld [vmem:[%s1522_s1 + $0x80] sm:$0xff]  ;;  %v664_v40 = vld [vmem:[#allocation2] sm:$0xff]  ;;  %v665_v41 = vld [vmem:[#allocation2 + $0x8] sm:$0xff] }
   0xe   :  { %v104_v4 = vld.sshfl [vmem:[#allocation1 + $0x10] sm:$0xff pattern:$0x75316420]  ;;  %v105_v5 = vld.sshfl [vmem:[#allocation1 + $0x18] sm:$0xff pattern:$0x75316420] }
   0xf   :  { %1133 = vmatpush.msk.msra.mxu2 %vm203_vm0, %v104_v4  ;;  %1166 = vmatpush.msk.msra.mxu3 %vm203_vm0, %v105_v5  ;;  %v102_v6 = vld.sshfl [vmem:[#allocation1] sm:$0xff pattern:$0x75316420]  ;;  %v103_v7 = vld.sshfl [vmem:[#allocation1 + $0x8] sm:$0xff pattern:$0x75316420] }
  0x10   :  { %1134 = vmatmul.msk.f32.vlgmr.msra.gmra.mxu2 %vm106_vm1, %v63_v3  ;;  %1167 = vmatmul.msk.f32.vlgmr.msra.gmra.mxu3 %vm106_vm1, %v63_v3  ;;  %v79_v39 = vmul.f32 2.0, %v47_v38  ;;  %v666_v46 = vld [vmem:[#allocation2 + $0x10] sm:$0xff]  ;;  %v667_v47 = vld [vmem:[#allocation2 + $0x18] sm:$0xff]  ;;  %v48_v48 = vld [vmem:[%s1522_s1 + $0x88] sm:$0xff] }
  0x11   :  { %1067 = vmatpush.msk.msra.mxu0 %vm203_vm0, %v102_v6  ;;  %1100 = vmatpush.msk.msra.mxu1 %vm203_vm0, %v103_v7  ;;  %v80_v53 = vmul.f32 2.0, %v48_v48  ;;  %v668_v54 = vld [vmem:[#allocation2 + $0x20] sm:$0xff]  ;;  %v669_v55 = vld [vmem:[#allocation2 + $0x28] sm:$0xff]  ;;  %v670_v60 = vld [vmem:[#allocation2 + $0x30] sm:$0xff] }
  0x12   :  { %1068 = vmatmul.msk.f32.vlgmr.msra.gmra.mxu0 %vm106_vm1, %v63_v3  ;;  %1101 = vmatmul.msk.f32.vlgmr.msra.gmra.mxu1 %vm106_vm1, %v63_v3  ;;  %v671_v61 = vld [vmem:[#allocation2 + $0x38] sm:$0xff]  ;;  %v49_v62 = vld [vmem:[%s1522_s1 + $0x90] sm:$0xff]  ;;  %v672_v4 = vld [vmem:[#allocation2 + $0x40] sm:$0xff] }
  0x13   :  { %v81_v3 = vmul.f32 2.0, %v49_v62  ;;  %v673_v5 = vld [vmem:[#allocation2 + $0x48] sm:$0xff]  ;;  %v674_v10 = vld [vmem:[#allocation2 + $0x50] sm:$0xff]  ;;  %v676_v18 = vld [vmem:[#allocation2 + $0x60] sm:$0xff] }
  0x14   :  { %v50_v12 = vld [vmem:[%s1522_s1 + $0x98] sm:$0xff]  ;;  %v51_v26 = vld [vmem:[%s1522_s1 + $0xa0] sm:$0xff]  ;;  %v680_v32 = vld [vmem:[#allocation2 + $0x80] sm:$0xff] }
  0x15   :  { %v678_v24 = vld [vmem:[#allocation2 + $0x70] sm:$0xff] }
  0x16   :  { %v682_v38 = vld [vmem:[#allocation2 + $0x90] sm:$0xff] }
  0x18   :  { %1135 = vmatmul.msk.f32.gmra.mxu2 %vm106_vm1, %v64_v9  ;;  %1168 = vmatmul.msk.f32.gmra.mxu3 %vm106_vm1, %v64_v9 }
  0x1a   :  { %1069 = vmatmul.msk.f32.gmra.mxu0 %vm106_vm1, %v64_v9  ;;  %1102 = vmatmul.msk.f32.gmra.mxu1 %vm106_vm1, %v64_v9 }
  0x20   :  { %1136 = vmatmul.msk.f32.gmra.mxu2 %vm106_vm1, %v65_v11  ;;  %1169 = vmatmul.msk.f32.gmra.mxu3 %vm106_vm1, %v65_v11 }
  0x22   :  { %1070 = vmatmul.msk.f32.gmra.mxu0 %vm106_vm1, %v65_v11  ;;  %1103 = vmatmul.msk.f32.gmra.mxu1 %vm106_vm1, %v65_v11  ;;  %v675_v11 = vld [vmem:[#allocation2 + $0x58] sm:$0xff] }
  0x28   :  { %1137 = vmatmul.msk.f32.gmra.mxu2 %vm106_vm1, %v66_v13  ;;  %1170 = vmatmul.msk.f32.gmra.mxu3 %vm106_vm1, %v66_v13 }
  0x2a   :  { %1071 = vmatmul.msk.f32.gmra.mxu0 %vm106_vm1, %v66_v13  ;;  %1104 = vmatmul.msk.f32.gmra.mxu1 %vm106_vm1, %v66_v13 }
  0x30   :  { %1138 = vmatmul.msk.f32.gmra.mxu2 %vm106_vm1, %v67_v15  ;;  %1171 = vmatmul.msk.f32.gmra.mxu3 %vm106_vm1, %v67_v15 }
  0x32   :  { %1072 = vmatmul.msk.f32.gmra.mxu0 %vm106_vm1, %v67_v15  ;;  %1105 = vmatmul.msk.f32.gmra.mxu1 %vm106_vm1, %v67_v15 }
  0x38   :  { %1139 = vmatmul.msk.f32.gmra.mxu2 %vm106_vm1, %v68_v17  ;;  %1172 = vmatmul.msk.f32.gmra.mxu3 %vm106_vm1, %v68_v17 }
  0x3a   :  { %1073 = vmatmul.msk.f32.gmra.mxu0 %vm106_vm1, %v68_v17  ;;  %1106 = vmatmul.msk.f32.gmra.mxu1 %vm106_vm1, %v68_v17  ;;  %v82_v17 = vmul.f32 2.0, %v50_v12 }
  0x40   :  { %1140 = vmatmul.msk.f32.gmra.mxu2 %vm106_vm1, %v69_v19  ;;  %1173 = vmatmul.msk.f32.gmra.mxu3 %vm106_vm1, %v69_v19 }
  0x42   :  { %1074 = vmatmul.msk.f32.gmra.mxu0 %vm106_vm1, %v69_v19  ;;  %1107 = vmatmul.msk.f32.gmra.mxu1 %vm106_vm1, %v69_v19  ;;  %v677_v19 = vld [vmem:[#allocation2 + $0x68] sm:$0xff] }
  0x48   :  { %1141 = vmatmul.msk.f32.gmra.mxu2 %vm106_vm1, %v70_v21  ;;  %1174 = vmatmul.msk.f32.gmra.mxu3 %vm106_vm1, %v70_v21 }
  0x4a   :  { %1075 = vmatmul.msk.f32.gmra.mxu0 %vm106_vm1, %v70_v21  ;;  %1108 = vmatmul.msk.f32.gmra.mxu1 %vm106_vm1, %v70_v21 }
  0x50   :  { %1142 = vmatmul.msk.f32.gmra.mxu2 %vm106_vm1, %v71_v23  ;;  %1175 = vmatmul.msk.f32.gmra.mxu3 %vm106_vm1, %v71_v23 }
  0x52   :  { %1076 = vmatmul.msk.f32.gmra.mxu0 %vm106_vm1, %v71_v23  ;;  %1109 = vmatmul.msk.f32.gmra.mxu1 %vm106_vm1, %v71_v23 }
  0x58   :  { %1143 = vmatmul.msk.f32.gmra.mxu2 %vm106_vm1, %v72_v25  ;;  %1176 = vmatmul.msk.f32.gmra.mxu3 %vm106_vm1, %v72_v25 }
  0x5a   :  { %1077 = vmatmul.msk.f32.gmra.mxu0 %vm106_vm1, %v72_v25  ;;  %1110 = vmatmul.msk.f32.gmra.mxu1 %vm106_vm1, %v72_v25  ;;  %v679_v25 = vld [vmem:[#allocation2 + $0x78] sm:$0xff] }
  0x60   :  { %1144 = vmatmul.msk.f32.gmra.mxu2 %vm106_vm1, %v73_v27  ;;  %1177 = vmatmul.msk.f32.gmra.mxu3 %vm106_vm1, %v73_v27 }
  0x62   :  { %1078 = vmatmul.msk.f32.gmra.mxu0 %vm106_vm1, %v73_v27  ;;  %1111 = vmatmul.msk.f32.gmra.mxu1 %vm106_vm1, %v73_v27 }
  0x68   :  { %1145 = vmatmul.msk.f32.gmra.mxu2 %vm106_vm1, %v74_v29  ;;  %1178 = vmatmul.msk.f32.gmra.mxu3 %vm106_vm1, %v74_v29 }
  0x6a   :  { %1079 = vmatmul.msk.f32.gmra.mxu0 %vm106_vm1, %v74_v29  ;;  %1112 = vmatmul.msk.f32.gmra.mxu1 %vm106_vm1, %v74_v29 }
  0x70   :  { %1146 = vmatmul.msk.f32.gmra.mxu2 %vm106_vm1, %v75_v31  ;;  %1179 = vmatmul.msk.f32.gmra.mxu3 %vm106_vm1, %v75_v31 }
  0x72   :  { %1080 = vmatmul.msk.f32.gmra.mxu0 %vm106_vm1, %v75_v31  ;;  %1113 = vmatmul.msk.f32.gmra.mxu1 %vm106_vm1, %v75_v31  ;;  %v83_v31 = vmul.f32 2.0, %v51_v26 }
  0x78   :  { %1147 = vmatmul.msk.f32.gmra.mxu2 %vm106_vm1, %v76_v33  ;;  %1180 = vmatmul.msk.f32.gmra.mxu3 %vm106_vm1, %v76_v33 }
  0x7a   :  { %1081 = vmatmul.msk.f32.gmra.mxu0 %vm106_vm1, %v76_v33  ;;  %1114 = vmatmul.msk.f32.gmra.mxu1 %vm106_vm1, %v76_v33  ;;  %v681_v33 = vld [vmem:[#allocation2 + $0x88] sm:$0xff] }
  0x80   :  { %1148 = vmatmul.msk.f32.gmra.mxu2 %vm106_vm1, %v77_v35  ;;  %1181 = vmatmul.msk.f32.gmra.mxu3 %vm106_vm1, %v77_v35 }
  0x82   :  { %1082 = vmatmul.msk.f32.gmra.mxu0 %vm106_vm1, %v77_v35  ;;  %1115 = vmatmul.msk.f32.gmra.mxu1 %vm106_vm1, %v77_v35 }
  0x88   :  { %1149 = vmatmul.msk.f32.gmra.mxu2 %vm106_vm1, %v78_v37  ;;  %1182 = vmatmul.msk.f32.gmra.mxu3 %vm106_vm1, %v78_v37 }
  0x8a   :  { %1083 = vmatmul.msk.f32.gmra.mxu0 %vm106_vm1, %v78_v37  ;;  %1116 = vmatmul.msk.f32.gmra.mxu1 %vm106_vm1, %v78_v37 }
  0x8f   :  { %v229_v42 = vpop.f32.mrf.mxu0  ;;  %v342_v43 = vpop.f32.mrf.mxu1 }
  0x90   :  { %1150 = vmatmul.msk.f32.gmra.mxu2 %vm106_vm1, %v79_v39  ;;  %1183 = vmatmul.msk.f32.gmra.mxu3 %vm106_vm1, %v79_v39  ;;  %v792_v44 = vadd.f32 %v664_v40, %v229_v42  ;;  %v793_v45 = vadd.f32 %v665_v41, %v342_v43  ;;  %v52_v40 = vld [vmem:[%s1522_s1 + $0xa8] sm:$0xff] }
  0x92   :  { %920 = vst [vmem:[#allocation5] sm:$0xff] %v792_v44  ;;  %1084 = vmatmul.msk.f32.gmra.mxu0 %vm106_vm1, %v79_v39  ;;  %1117 = vmatmul.msk.f32.gmra.mxu1 %vm106_vm1, %v79_v39  ;;  %v683_v39 = vld [vmem:[#allocation2 + $0x98] sm:$0xff] }
  0x93   :  { %921 = vst [vmem:[#allocation5 + $0x8] sm:$0xff] %v793_v45  ;;  %v455_v49 = vpop.f32.mrf.mxu2  ;;  %v568_v50 = vpop.f32.mrf.mxu3  ;;  %v84_v45 = vmul.f32 2.0, %v52_v40 }
  0x94   :  { %v794_v51 = vadd.f32 %v666_v46, %v455_v49  ;;  %v795_v52 = vadd.f32 %v667_v47, %v568_v50  ;;  %v684_v46 = vld [vmem:[#allocation2 + $0xa0] sm:$0xff]  ;;  %v685_v47 = vld [vmem:[#allocation2 + $0xa8] sm:$0xff] }
  0x96   :  { %922 = vst [vmem:[#allocation5 + $0x10] sm:$0xff] %v794_v51 }
  0x97   :  { %923 = vst [vmem:[#allocation5 + $0x18] sm:$0xff] %v795_v52  ;;  %v232_v56 = vpop.f32.mrf.mxu0  ;;  %v345_v57 = vpop.f32.mrf.mxu1  ;;  %v686_v52 = vld [vmem:[#allocation2 + $0xb0] sm:$0xff] }
  0x98   :  { %1151 = vmatmul.msk.f32.gmra.mxu2 %vm106_vm1, %v80_v53  ;;  %1184 = vmatmul.msk.f32.gmra.mxu3 %vm106_vm1, %v80_v53  ;;  %v796_v58 = vadd.f32 %v668_v54, %v232_v56  ;;  %v797_v59 = vadd.f32 %v669_v55, %v345_v57  ;;  %v53_v54 = vld [vmem:[%s1522_s1 + $0xb0] sm:$0xff] }
  0x9a   :  { %924 = vst [vmem:[#allocation5 + $0x20] sm:$0xff] %v796_v58  ;;  %1085 = vmatmul.msk.f32.gmra.mxu0 %vm106_vm1, %v80_v53  ;;  %1118 = vmatmul.msk.f32.gmra.mxu1 %vm106_vm1, %v80_v53  ;;  %v687_v53 = vld [vmem:[#allocation2 + $0xb8] sm:$0xff] }
  0x9b   :  { %925 = vst [vmem:[#allocation5 + $0x28] sm:$0xff] %v797_v59  ;;  %v458_v63 = vpop.f32.mrf.mxu2  ;;  %v571_v0 = vpop.f32.mrf.mxu3  ;;  %v85_v59 = vmul.f32 2.0, %v53_v54 }
  0x9c   :  { %v798_v1 = vadd.f32 %v670_v60, %v458_v63  ;;  %v799_v2 = vadd.f32 %v671_v61, %v571_v0  ;;  %v688_v60 = vld [vmem:[#allocation2 + $0xc0] sm:$0xff]  ;;  %v689_v61 = vld [vmem:[#allocation2 + $0xc8] sm:$0xff] }
  0x9e   :  { %926 = vst [vmem:[#allocation5 + $0x30] sm:$0xff] %v798_v1 }
  0x9f   :  { %927 = vst [vmem:[#allocation5 + $0x38] sm:$0xff] %v799_v2  ;;  %v235_v6 = vpop.f32.mrf.mxu0  ;;  %v348_v7 = vpop.f32.mrf.mxu1  ;;  %v690_v2 = vld [vmem:[#allocation2 + $0xd0] sm:$0xff] }
  0xa0   :  { %1152 = vmatmul.msk.f32.gmra.mxu2 %vm106_vm1, %v81_v3  ;;  %1185 = vmatmul.msk.f32.gmra.mxu3 %vm106_vm1, %v81_v3  ;;  %v800_v8 = vadd.f32 %v672_v4, %v235_v6  ;;  %v801_v9 = vadd.f32 %v673_v5, %v348_v7  ;;  %v54_v4 = vld [vmem:[%s1522_s1 + $0xb8] sm:$0xff] }
  0xa2   :  { %928 = vst [vmem:[#allocation5 + $0x40] sm:$0xff] %v800_v8  ;;  %1086 = vmatmul.msk.f32.gmra.mxu0 %vm106_vm1, %v81_v3  ;;  %1119 = vmatmul.msk.f32.gmra.mxu1 %vm106_vm1, %v81_v3  ;;  %v691_v3 = vld [vmem:[#allocation2 + $0xd8] sm:$0xff] }
  0xa3   :  { %929 = vst [vmem:[#allocation5 + $0x48] sm:$0xff] %v801_v9  ;;  %v461_v13 = vpop.f32.mrf.mxu2  ;;  %v574_v14 = vpop.f32.mrf.mxu3  ;;  %v86_v9 = vmul.f32 2.0, %v54_v4 }
  0xa4   :  { %v802_v15 = vadd.f32 %v674_v10, %v461_v13  ;;  %v803_v16 = vadd.f32 %v675_v11, %v574_v14  ;;  %v692_v10 = vld [vmem:[#allocation2 + $0xe0] sm:$0xff]  ;;  %v693_v11 = vld [vmem:[#allocation2 + $0xe8] sm:$0xff] }
  0xa6   :  { %930 = vst [vmem:[#allocation5 + $0x50] sm:$0xff] %v802_v15 }
  0xa7   :  { %931 = vst [vmem:[#allocation5 + $0x58] sm:$0xff] %v803_v16  ;;  %v238_v20 = vpop.f32.mrf.mxu0  ;;  %v351_v21 = vpop.f32.mrf.mxu1  ;;  %v694_v16 = vld [vmem:[#allocation2 + $0xf0] sm:$0xff] }
  0xa8   :  { %1153 = vmatmul.msk.f32.gmra.mxu2 %vm106_vm1, %v82_v17  ;;  %1186 = vmatmul.msk.f32.gmra.mxu3 %vm106_vm1, %v82_v17  ;;  %v804_v22 = vadd.f32 %v676_v18, %v238_v20  ;;  %v805_v23 = vadd.f32 %v677_v19, %v351_v21  ;;  %v55_v18 = vld [vmem:[%s1522_s1 + $0xc0] sm:$0xff] }
  0xaa   :  { %932 = vst [vmem:[#allocation5 + $0x60] sm:$0xff] %v804_v22  ;;  %1087 = vmatmul.msk.f32.gmra.mxu0 %vm106_vm1, %v82_v17  ;;  %1120 = vmatmul.msk.f32.gmra.mxu1 %vm106_vm1, %v82_v17  ;;  %v695_v17 = vld [vmem:[#allocation2 + $0xf8] sm:$0xff] }
  0xab   :  { %933 = vst [vmem:[#allocation5 + $0x68] sm:$0xff] %v805_v23  ;;  %v464_v27 = vpop.f32.mrf.mxu2  ;;  %v577_v28 = vpop.f32.mrf.mxu3  ;;  %v87_v23 = vmul.f32 2.0, %v55_v18 }
  0xac   :  { %v806_v29 = vadd.f32 %v678_v24, %v464_v27  ;;  %v807_v30 = vadd.f32 %v679_v25, %v577_v28  ;;  %v696_v24 = vld [vmem:[#allocation2 + $0x100] sm:$0xff]  ;;  %v697_v25 = vld [vmem:[#allocation2 + $0x108] sm:$0xff] }
  0xae   :  { %934 = vst [vmem:[#allocation5 + $0x70] sm:$0xff] %v806_v29 }
  0xaf   :  { %935 = vst [vmem:[#allocation5 + $0x78] sm:$0xff] %v807_v30  ;;  %v241_v34 = vpop.f32.mrf.mxu0  ;;  %v354_v35 = vpop.f32.mrf.mxu1  ;;  %v698_v30 = vld [vmem:[#allocation2 + $0x110] sm:$0xff] }
  0xb0   :  { %1154 = vmatmul.msk.f32.gmra.mxu2 %vm106_vm1, %v83_v31  ;;  %1187 = vmatmul.msk.f32.gmra.mxu3 %vm106_vm1, %v83_v31  ;;  %v808_v36 = vadd.f32 %v680_v32, %v241_v34  ;;  %v809_v37 = vadd.f32 %v681_v33, %v354_v35  ;;  %v56_v32 = vld [vmem:[%s1522_s1 + $0xc8] sm:$0xff] }
  0xb2   :  { %936 = vst [vmem:[#allocation5 + $0x80] sm:$0xff] %v808_v36  ;;  %1088 = vmatmul.msk.f32.gmra.mxu0 %vm106_vm1, %v83_v31  ;;  %1121 = vmatmul.msk.f32.gmra.mxu1 %vm106_vm1, %v83_v31  ;;  %v699_v31 = vld [vmem:[#allocation2 + $0x118] sm:$0xff] }
  0xb3   :  { %937 = vst [vmem:[#allocation5 + $0x88] sm:$0xff] %v809_v37  ;;  %v467_v41 = vpop.f32.mrf.mxu2  ;;  %v580_v42 = vpop.f32.mrf.mxu3  ;;  %v88_v37 = vmul.f32 2.0, %v56_v32 }
  0xb4   :  { %v810_v43 = vadd.f32 %v682_v38, %v467_v41  ;;  %v811_v44 = vadd.f32 %v683_v39, %v580_v42  ;;  %v700_v38 = vld [vmem:[#allocation2 + $0x120] sm:$0xff]  ;;  %v701_v39 = vld [vmem:[#allocation2 + $0x128] sm:$0xff] }
  0xb6   :  { %938 = vst [vmem:[#allocation5 + $0x90] sm:$0xff] %v810_v43 }
  0xb7   :  { %939 = vst [vmem:[#allocation5 + $0x98] sm:$0xff] %v811_v44  ;;  %v244_v48 = vpop.f32.mrf.mxu0  ;;  %v357_v49 = vpop.f32.mrf.mxu1  ;;  %v702_v44 = vld [vmem:[#allocation2 + $0x130] sm:$0xff] }
  0xb8   :  { %1155 = vmatmul.msk.f32.gmra.mxu2 %vm106_vm1, %v84_v45  ;;  %1188 = vmatmul.msk.f32.gmra.mxu3 %vm106_vm1, %v84_v45  ;;  %v812_v50 = vadd.f32 %v684_v46, %v244_v48  ;;  %v813_v51 = vadd.f32 %v685_v47, %v357_v49  ;;  %v57_v46 = vld [vmem:[%s1522_s1 + $0xd0] sm:$0xff] }
  0xba   :  { %940 = vst [vmem:[#allocation5 + $0xa0] sm:$0xff] %v812_v50  ;;  %1089 = vmatmul.msk.f32.gmra.mxu0 %vm106_vm1, %v84_v45  ;;  %1122 = vmatmul.msk.f32.gmra.mxu1 %vm106_vm1, %v84_v45  ;;  %v703_v45 = vld [vmem:[#allocation2 + $0x138] sm:$0xff] }
  0xbb   :  { %941 = vst [vmem:[#allocation5 + $0xa8] sm:$0xff] %v813_v51  ;;  %v470_v55 = vpop.f32.mrf.mxu2  ;;  %v583_v56 = vpop.f32.mrf.mxu3  ;;  %v89_v51 = vmul.f32 2.0, %v57_v46 }
  0xbc   :  { %v814_v57 = vadd.f32 %v686_v52, %v470_v55  ;;  %v815_v58 = vadd.f32 %v687_v53, %v583_v56  ;;  %v704_v52 = vld [vmem:[#allocation2 + $0x140] sm:$0xff]  ;;  %v705_v53 = vld [vmem:[#allocation2 + $0x148] sm:$0xff] }
  0xbe   :  { %942 = vst [vmem:[#allocation5 + $0xb0] sm:$0xff] %v814_v57 }
  0xbf   :  { %943 = vst [vmem:[#allocation5 + $0xb8] sm:$0xff] %v815_v58  ;;  %v247_v62 = vpop.f32.mrf.mxu0  ;;  %v360_v63 = vpop.f32.mrf.mxu1  ;;  %v706_v58 = vld [vmem:[#allocation2 + $0x150] sm:$0xff] }
  0xc0   :  { %1156 = vmatmul.msk.f32.gmra.mxu2 %vm106_vm1, %v85_v59  ;;  %1189 = vmatmul.msk.f32.gmra.mxu3 %vm106_vm1, %v85_v59  ;;  %v816_v0 = vadd.f32 %v688_v60, %v247_v62  ;;  %v817_v1 = vadd.f32 %v689_v61, %v360_v63  ;;  %v58_v60 = vld [vmem:[%s1522_s1 + $0xd8] sm:$0xff] }
  0xc2   :  { %944 = vst [vmem:[#allocation5 + $0xc0] sm:$0xff] %v816_v0  ;;  %1090 = vmatmul.msk.f32.gmra.mxu0 %vm106_vm1, %v85_v59  ;;  %1123 = vmatmul.msk.f32.gmra.mxu1 %vm106_vm1, %v85_v59  ;;  %v707_v59 = vld [vmem:[#allocation2 + $0x158] sm:$0xff] }
  0xc3   :  { %945 = vst [vmem:[#allocation5 + $0xc8] sm:$0xff] %v817_v1  ;;  %v473_v5 = vpop.f32.mrf.mxu2  ;;  %v586_v6 = vpop.f32.mrf.mxu3  ;;  %v90_v1 = vmul.f32 2.0, %v58_v60 }
  0xc4   :  { %v818_v7 = vadd.f32 %v690_v2, %v473_v5  ;;  %v819_v8 = vadd.f32 %v691_v3, %v586_v6  ;;  %v708_v2 = vld [vmem:[#allocation2 + $0x160] sm:$0xff]  ;;  %v709_v3 = vld [vmem:[#allocation2 + $0x168] sm:$0xff] }
  0xc6   :  { %946 = vst [vmem:[#allocation5 + $0xd0] sm:$0xff] %v818_v7 }
  0xc7   :  { %947 = vst [vmem:[#allocation5 + $0xd8] sm:$0xff] %v819_v8  ;;  %v250_v12 = vpop.f32.mrf.mxu0  ;;  %v363_v13 = vpop.f32.mrf.mxu1  ;;  %v710_v8 = vld [vmem:[#allocation2 + $0x170] sm:$0xff] }
  0xc8   :  { %1157 = vmatmul.msk.f32.gmra.mxu2 %vm106_vm1, %v86_v9  ;;  %1190 = vmatmul.msk.f32.gmra.mxu3 %vm106_vm1, %v86_v9  ;;  %v820_v14 = vadd.f32 %v692_v10, %v250_v12  ;;  %v821_v15 = vadd.f32 %v693_v11, %v363_v13  ;;  %v59_v10 = vld [vmem:[%s1522_s1 + $0xe0] sm:$0xff] }
  0xca   :  { %948 = vst [vmem:[#allocation5 + $0xe0] sm:$0xff] %v820_v14  ;;  %1091 = vmatmul.msk.f32.gmra.mxu0 %vm106_vm1, %v86_v9  ;;  %1124 = vmatmul.msk.f32.gmra.mxu1 %vm106_vm1, %v86_v9  ;;  %v711_v9 = vld [vmem:[#allocation2 + $0x178] sm:$0xff] }
  0xcb   :  { %949 = vst [vmem:[#allocation5 + $0xe8] sm:$0xff] %v821_v15  ;;  %v476_v19 = vpop.f32.mrf.mxu2  ;;  %v589_v20 = vpop.f32.mrf.mxu3  ;;  %v91_v15 = vmul.f32 2.0, %v59_v10 }
  0xcc   :  { %v822_v21 = vadd.f32 %v694_v16, %v476_v19  ;;  %v823_v22 = vadd.f32 %v695_v17, %v589_v20  ;;  %v712_v16 = vld [vmem:[#allocation2 + $0x180] sm:$0xff]  ;;  %v713_v17 = vld [vmem:[#allocation2 + $0x188] sm:$0xff] }
  0xce   :  { %950 = vst [vmem:[#allocation5 + $0xf0] sm:$0xff] %v822_v21 }
  0xcf   :  { %951 = vst [vmem:[#allocation5 + $0xf8] sm:$0xff] %v823_v22  ;;  %v253_v26 = vpop.f32.mrf.mxu0  ;;  %v366_v27 = vpop.f32.mrf.mxu1  ;;  %v714_v22 = vld [vmem:[#allocation2 + $0x190] sm:$0xff] }
  0xd0   :  { %1158 = vmatmul.msk.f32.gmra.mxu2 %vm106_vm1, %v87_v23  ;;  %1191 = vmatmul.msk.f32.gmra.mxu3 %vm106_vm1, %v87_v23  ;;  %v824_v28 = vadd.f32 %v696_v24, %v253_v26  ;;  %v825_v29 = vadd.f32 %v697_v25, %v366_v27  ;;  %v60_v24 = vld [vmem:[%s1522_s1 + $0xe8] sm:$0xff] }
  0xd2   :  { %952 = vst [vmem:[#allocation5 + $0x100] sm:$0xff] %v824_v28  ;;  %1092 = vmatmul.msk.f32.gmra.mxu0 %vm106_vm1, %v87_v23  ;;  %1125 = vmatmul.msk.f32.gmra.mxu1 %vm106_vm1, %v87_v23  ;;  %v715_v23 = vld [vmem:[#allocation2 + $0x198] sm:$0xff] }
  0xd3   :  { %953 = vst [vmem:[#allocation5 + $0x108] sm:$0xff] %v825_v29  ;;  %v479_v33 = vpop.f32.mrf.mxu2  ;;  %v592_v34 = vpop.f32.mrf.mxu3  ;;  %v92_v29 = vmul.f32 2.0, %v60_v24  ;;  %v734_v24 = vld [vmem:[#allocation2 + $0x230] sm:$0xff] }
  0xd4   :  { %v826_v35 = vadd.f32 %v698_v30, %v479_v33  ;;  %v827_v36 = vadd.f32 %v699_v31, %v592_v34  ;;  %v716_v30 = vld [vmem:[#allocation2 + $0x1a0] sm:$0xff]  ;;  %v717_v31 = vld [vmem:[#allocation2 + $0x1a8] sm:$0xff] }
  0xd6   :  { %954 = vst [vmem:[#allocation5 + $0x110] sm:$0xff] %v826_v35 }
  0xd7   :  { %955 = vst [vmem:[#allocation5 + $0x118] sm:$0xff] %v827_v36  ;;  %v256_v40 = vpop.f32.mrf.mxu0  ;;  %v369_v41 = vpop.f32.mrf.mxu1  ;;  %v718_v36 = vld [vmem:[#allocation2 + $0x1b0] sm:$0xff] }
  0xd8   :  { %1159 = vmatmul.msk.f32.gmra.mxu2 %vm106_vm1, %v88_v37  ;;  %1192 = vmatmul.msk.f32.gmra.mxu3 %vm106_vm1, %v88_v37  ;;  %v828_v42 = vadd.f32 %v700_v38, %v256_v40  ;;  %v829_v43 = vadd.f32 %v701_v39, %v369_v41  ;;  %v61_v38 = vld [vmem:[%s1522_s1 + $0xf0] sm:$0xff] }
  0xda   :  { %956 = vst [vmem:[#allocation5 + $0x120] sm:$0xff] %v828_v42  ;;  %1093 = vmatmul.msk.f32.gmra.mxu0 %vm106_vm1, %v88_v37  ;;  %1126 = vmatmul.msk.f32.gmra.mxu1 %vm106_vm1, %v88_v37  ;;  %v719_v37 = vld [vmem:[#allocation2 + $0x1b8] sm:$0xff] }
  0xdb   :  { %957 = vst [vmem:[#allocation5 + $0x128] sm:$0xff] %v829_v43  ;;  %v482_v47 = vpop.f32.mrf.mxu2  ;;  %v595_v48 = vpop.f32.mrf.mxu3  ;;  %v93_v43 = vmul.f32 2.0, %v61_v38 }
  0xdc   :  { %v830_v49 = vadd.f32 %v702_v44, %v482_v47  ;;  %v831_v50 = vadd.f32 %v703_v45, %v595_v48  ;;  %v720_v44 = vld [vmem:[#allocation2 + $0x1c0] sm:$0xff]  ;;  %v721_v45 = vld [vmem:[#allocation2 + $0x1c8] sm:$0xff] }
  0xde   :  { %958 = vst [vmem:[#allocation5 + $0x130] sm:$0xff] %v830_v49 }
  0xdf   :  { %959 = vst [vmem:[#allocation5 + $0x138] sm:$0xff] %v831_v50  ;;  %v259_v54 = vpop.f32.mrf.mxu0  ;;  %v372_v55 = vpop.f32.mrf.mxu1  ;;  %v722_v50 = vld [vmem:[#allocation2 + $0x1d0] sm:$0xff] }
  0xe0   :  { %1160 = vmatmul.msk.f32.gmra.mxu2 %vm106_vm1, %v89_v51  ;;  %1193 = vmatmul.msk.f32.gmra.mxu3 %vm106_vm1, %v89_v51  ;;  %v832_v56 = vadd.f32 %v704_v52, %v259_v54  ;;  %v833_v57 = vadd.f32 %v705_v53, %v372_v55  ;;  %v62_v52 = vld [vmem:[%s1522_s1 + $0xf8] sm:$0xff]  ;;  %s1258_s1 = smov [#allocation5]  }
  0xe1   :  { %s1052_s4 = sshll.u32 %s1258_s1, 4  ;;  %s1053_s4 = int_to_ptr.vmem [resolvable:$true] %s1052_s4 }
  0xe2   :  { %960 = vst [vmem:[#allocation5 + $0x140] sm:$0xff] %v832_v56  ;;  %1094 = vmatmul.msk.f32.gmra.mxu0 %vm106_vm1, %v89_v51  ;;  %1127 = vmatmul.msk.f32.gmra.mxu1 %vm106_vm1, %v89_v51  ;;  %v723_v51 = vld [vmem:[#allocation2 + $0x1d8] sm:$0xff] }
  0xe3   :  { %961 = vst [vmem:[#allocation5 + $0x148] sm:$0xff] %v833_v57  ;;  %v485_v61 = vpop.f32.mrf.mxu2  ;;  %v598_v62 = vpop.f32.mrf.mxu3  ;;  %v94_v57 = vmul.f32 2.0, %v62_v52 }
  0xe4   :  { %v834_v63 = vadd.f32 %v706_v58, %v485_v61  ;;  %v835_v0 = vadd.f32 %v707_v59, %v598_v62  ;;  %v724_v58 = vld [vmem:[#allocation2 + $0x1e0] sm:$0xff]  ;;  %v725_v59 = vld [vmem:[#allocation2 + $0x1e8] sm:$0xff] }
  0xe6   :  { %962 = vst [vmem:[#allocation5 + $0x150] sm:$0xff] %v834_v63 }
  0xe7   :  { %963 = vst [vmem:[#allocation5 + $0x158] sm:$0xff] %v835_v0  ;;  %v262_v4 = vpop.f32.mrf.mxu0  ;;  %v375_v5 = vpop.f32.mrf.mxu1  ;;  %v726_v0 = vld [vmem:[#allocation2 + $0x1f0] sm:$0xff] }
  0xe8   :  { %1161 = vmatmul.msk.f32.gmra.mxu2 %vm106_vm1, %v90_v1  ;;  %1194 = vmatmul.msk.f32.gmra.mxu3 %vm106_vm1, %v90_v1  ;;  %v836_v6 = vadd.f32 %v708_v2, %v262_v4  ;;  %v837_v7 = vadd.f32 %v709_v3, %v375_v5 }
  0xea   :  { %964 = vst [vmem:[#allocation5 + $0x160] sm:$0xff] %v836_v6  ;;  %1095 = vmatmul.msk.f32.gmra.mxu0 %vm106_vm1, %v90_v1  ;;  %1128 = vmatmul.msk.f32.gmra.mxu1 %vm106_vm1, %v90_v1  ;;  %v727_v1 = vld [vmem:[#allocation2 + $0x1f8] sm:$0xff]  ;;  %v728_v6 = vld [vmem:[#allocation2 + $0x200] sm:$0xff] }
  0xeb   :  { %965 = vst [vmem:[#allocation5 + $0x168] sm:$0xff] %v837_v7  ;;  %v488_v11 = vpop.f32.mrf.mxu2  ;;  %v601_v12 = vpop.f32.mrf.mxu3  ;;  %v729_v7 = vld [vmem:[#allocation2 + $0x208] sm:$0xff] }
  0xec   :  { %v838_v13 = vadd.f32 %v710_v8, %v488_v11  ;;  %v839_v14 = vadd.f32 %v711_v9, %v601_v12  ;;  %v730_v12 = vld [vmem:[#allocation2 + $0x210] sm:$0xff] }
  0xee   :  { %966 = vst [vmem:[#allocation5 + $0x170] sm:$0xff] %v838_v13  ;;  %v731_v13 = vld [vmem:[#allocation2 + $0x218] sm:$0xff] }
  0xef   :  { %967 = vst [vmem:[#allocation5 + $0x178] sm:$0xff] %v839_v14  ;;  %v265_v18 = vpop.f32.mrf.mxu0  ;;  %v378_v19 = vpop.f32.mrf.mxu1 }
  0xf0   :  { %1162 = vmatmul.msk.f32.gmra.mxu2 %vm106_vm1, %v91_v15  ;;  %1195 = vmatmul.msk.f32.gmra.mxu3 %vm106_vm1, %v91_v15  ;;  %v840_v20 = vadd.f32 %v712_v16, %v265_v18  ;;  %v841_v21 = vadd.f32 %v713_v17, %v378_v19  ;;  %v732_v18 = vld [vmem:[#allocation2 + $0x220] sm:$0xff]  ;;  %v733_v19 = vld [vmem:[#allocation2 + $0x228] sm:$0xff] }
  0xf2   :  { %968 = vst [vmem:[#allocation5 + $0x180] sm:$0xff] %v840_v20  ;;  %1096 = vmatmul.msk.f32.gmra.mxu0 %vm106_vm1, %v91_v15  ;;  %1129 = vmatmul.msk.f32.gmra.mxu1 %vm106_vm1, %v91_v15 }
  0xf3   :  { %969 = vst [vmem:[#allocation5 + $0x188] sm:$0xff] %v841_v21  ;;  %v491_v25 = vpop.f32.mrf.mxu2  ;;  %v604_v26 = vpop.f32.mrf.mxu3 }
  0xf4   :  { %v842_v27 = vadd.f32 %v714_v22, %v491_v25  ;;  %v843_v28 = vadd.f32 %v715_v23, %v604_v26  ;;  %v735_v25 = vld [vmem:[#allocation2 + $0x238] sm:$0xff] }
  0xf6   :  { %970 = vst [vmem:[#allocation5 + $0x190] sm:$0xff] %v842_v27 }
  0xf7   :  { %971 = vst [vmem:[#allocation5 + $0x198] sm:$0xff] %v843_v28  ;;  %v268_v32 = vpop.f32.mrf.mxu0  ;;  %v381_v33 = vpop.f32.mrf.mxu1 }
  0xf8   :  { %1163 = vmatmul.msk.f32.gmra.mxu2 %vm106_vm1, %v92_v29  ;;  %1196 = vmatmul.msk.f32.gmra.mxu3 %vm106_vm1, %v92_v29  ;;  %v844_v34 = vadd.f32 %v716_v30, %v268_v32  ;;  %v845_v35 = vadd.f32 %v717_v31, %v381_v33  ;;  %v736_v30 = vld [vmem:[#allocation2 + $0x240] sm:$0xff]  ;;  %v737_v31 = vld [vmem:[#allocation2 + $0x248] sm:$0xff] }
  0xfa   :  { %972 = vst [vmem:[#allocation5 + $0x1a0] sm:$0xff] %v844_v34  ;;  %1097 = vmatmul.msk.f32.gmra.mxu0 %vm106_vm1, %v92_v29  ;;  %1130 = vmatmul.msk.f32.gmra.mxu1 %vm106_vm1, %v92_v29 }
  0xfb   :  { %973 = vst [vmem:[#allocation5 + $0x1a8] sm:$0xff] %v845_v35  ;;  %v494_v39 = vpop.f32.mrf.mxu2  ;;  %v607_v40 = vpop.f32.mrf.mxu3 }
  0xfc   :  { %v846_v41 = vadd.f32 %v718_v36, %v494_v39  ;;  %v847_v42 = vadd.f32 %v719_v37, %v607_v40  ;;  %v738_v36 = vld [vmem:[#allocation2 + $0x250] sm:$0xff]  ;;  %v739_v37 = vld [vmem:[#allocation2 + $0x258] sm:$0xff] }
  0xfe   :  { %974 = vst [vmem:[#allocation5 + $0x1b0] sm:$0xff] %v846_v41 }
  0xff   :  { %975 = vst [vmem:[#allocation5 + $0x1b8] sm:$0xff] %v847_v42  ;;  %v271_v46 = vpop.f32.mrf.mxu0  ;;  %v384_v47 = vpop.f32.mrf.mxu1  ;;  %v740_v42 = vld [vmem:[#allocation2 + $0x260] sm:$0xff] }
 0x100   :  { %1164 = vmatmul.msk.f32.gmra.mxu2 %vm106_vm1, %v93_v43  ;;  %1197 = vmatmul.msk.f32.gmra.mxu3 %vm106_vm1, %v93_v43  ;;  %v848_v48 = vadd.f32 %v720_v44, %v271_v46  ;;  %v849_v49 = vadd.f32 %v721_v45, %v384_v47 }
 0x102   :  { %976 = vst [vmem:[#allocation5 + $0x1c0] sm:$0xff] %v848_v48  ;;  %1098 = vmatmul.msk.f32.gmra.mxu0 %vm106_vm1, %v93_v43  ;;  %1131 = vmatmul.msk.f32.gmra.mxu1 %vm106_vm1, %v93_v43  ;;  %v741_v43 = vld [vmem:[#allocation2 + $0x268] sm:$0xff]  ;;  %v742_v48 = vld [vmem:[#allocation2 + $0x270] sm:$0xff] }
 0x103   :  { %977 = vst [vmem:[#allocation5 + $0x1c8] sm:$0xff] %v849_v49  ;;  %v497_v53 = vpop.f32.mrf.mxu2  ;;  %v610_v54 = vpop.f32.mrf.mxu3  ;;  %v743_v49 = vld [vmem:[#allocation2 + $0x278] sm:$0xff] }
 0x104   :  { %v850_v55 = vadd.f32 %v722_v50, %v497_v53  ;;  %v851_v56 = vadd.f32 %v723_v51, %v610_v54  ;;  %v744_v54 = vld [vmem:[#allocation2 + $0x280] sm:$0xff] }
 0x106   :  { %978 = vst [vmem:[#allocation5 + $0x1d0] sm:$0xff] %v850_v55  ;;  %v745_v55 = vld [vmem:[#allocation2 + $0x288] sm:$0xff] }
 0x107   :  { %979 = vst [vmem:[#allocation5 + $0x1d8] sm:$0xff] %v851_v56  ;;  %v274_v60 = vpop.f32.mrf.mxu0  ;;  %v387_v61 = vpop.f32.mrf.mxu1 }
 0x108   :  { %1165 = vmatmul.msk.f32.gmra.mxu2 %vm106_vm1, %v94_v57  ;;  %1198 = vmatmul.msk.f32.gmra.mxu3 %vm106_vm1, %v94_v57  ;;  %v852_v62 = vadd.f32 %v724_v58, %v274_v60  ;;  %v853_v63 = vadd.f32 %v725_v59, %v387_v61  ;;  %v746_v60 = vld [vmem:[#allocation2 + $0x290] sm:$0xff]  ;;  %v747_v61 = vld [vmem:[#allocation2 + $0x298] sm:$0xff] }
 0x10a   :  { %980 = vst [vmem:[#allocation5 + $0x1e0] sm:$0xff] %v852_v62  ;;  %1099 = vmatmul.msk.f32.gmra.mxu0 %vm106_vm1, %v94_v57  ;;  %1132 = vmatmul.msk.f32.gmra.mxu1 %vm106_vm1, %v94_v57 }
 0x10b   :  { %981 = vst [vmem:[#allocation5 + $0x1e8] sm:$0xff] %v853_v63  ;;  %v500_v2 = vpop.f32.mrf.mxu2  ;;  %v613_v3 = vpop.f32.mrf.mxu3 }
 0x10c   :  { %v854_v4 = vadd.f32 %v726_v0, %v500_v2  ;;  %v855_v5 = vadd.f32 %v727_v1, %v613_v3  ;;  %v748_v2 = vld [vmem:[#allocation2 + $0x2a0] sm:$0xff]  ;;  %v749_v3 = vld [vmem:[#allocation2 + $0x2a8] sm:$0xff] }
 0x10e   :  { %982 = vst [vmem:[#allocation5 + $0x1f0] sm:$0xff] %v854_v4 }
 0x10f   :  { %983 = vst [vmem:[#allocation5 + $0x1f8] sm:$0xff] %v855_v5  ;;  %v277_v8 = vpop.f32.mrf.mxu0  ;;  %v390_v9 = vpop.f32.mrf.mxu1 }
 0x110   :  { %v856_v10 = vadd.f32 %v728_v6, %v277_v8  ;;  %v857_v11 = vadd.f32 %v729_v7, %v390_v9  ;;  %v750_v8 = vld [vmem:[#allocation2 + $0x2b0] sm:$0xff]  ;;  %v751_v9 = vld [vmem:[#allocation2 + $0x2b8] sm:$0xff] }
 0x112   :  { %984 = vst [vmem:[#allocation5 + $0x200] sm:$0xff] %v856_v10 }
 0x113   :  { %985 = vst [vmem:[#allocation5 + $0x208] sm:$0xff] %v857_v11  ;;  %v503_v14 = vpop.f32.mrf.mxu2  ;;  %v616_v15 = vpop.f32.mrf.mxu3 }
 0x114   :  { %v858_v16 = vadd.f32 %v730_v12, %v503_v14  ;;  %v859_v17 = vadd.f32 %v731_v13, %v616_v15  ;;  %v752_v14 = vld [vmem:[#allocation2 + $0x2c0] sm:$0xff]  ;;  %v753_v15 = vld [vmem:[#allocation2 + $0x2c8] sm:$0xff] }
 0x116   :  { %986 = vst [vmem:[#allocation5 + $0x210] sm:$0xff] %v858_v16 }
 0x117   :  { %987 = vst [vmem:[#allocation5 + $0x218] sm:$0xff] %v859_v17  ;;  %v280_v20 = vpop.f32.mrf.mxu0  ;;  %v393_v21 = vpop.f32.mrf.mxu1 }
 0x118   :  { %v860_v22 = vadd.f32 %v732_v18, %v280_v20  ;;  %v861_v23 = vadd.f32 %v733_v19, %v393_v21  ;;  %v754_v20 = vld [vmem:[#allocation2 + $0x2d0] sm:$0xff]  ;;  %v755_v21 = vld [vmem:[#allocation2 + $0x2d8] sm:$0xff] }
 0x11a   :  { %988 = vst [vmem:[#allocation5 + $0x220] sm:$0xff] %v860_v22 }
 0x11b   :  { %989 = vst [vmem:[#allocation5 + $0x228] sm:$0xff] %v861_v23  ;;  %v506_v26 = vpop.f32.mrf.mxu2  ;;  %v619_v27 = vpop.f32.mrf.mxu3 }
 0x11c   :  { %v862_v28 = vadd.f32 %v734_v24, %v506_v26  ;;  %v863_v29 = vadd.f32 %v735_v25, %v619_v27  ;;  %v756_v26 = vld [vmem:[#allocation2 + $0x2e0] sm:$0xff]  ;;  %v757_v27 = vld [vmem:[#allocation2 + $0x2e8] sm:$0xff] }
 0x11e   :  { %990 = vst [vmem:[#allocation5 + $0x230] sm:$0xff] %v862_v28 }
 0x11f   :  { %991 = vst [vmem:[#allocation5 + $0x238] sm:$0xff] %v863_v29  ;;  %v283_v32 = vpop.f32.mrf.mxu0  ;;  %v396_v33 = vpop.f32.mrf.mxu1 }
 0x120   :  { %v864_v34 = vadd.f32 %v736_v30, %v283_v32  ;;  %v865_v35 = vadd.f32 %v737_v31, %v396_v33  ;;  %v758_v32 = vld [vmem:[#allocation2 + $0x2f0] sm:$0xff]  ;;  %v759_v33 = vld [vmem:[#allocation2 + $0x2f8] sm:$0xff] }
 0x122   :  { %992 = vst [vmem:[#allocation5 + $0x240] sm:$0xff] %v864_v34 }
 0x123   :  { %993 = vst [vmem:[#allocation5 + $0x248] sm:$0xff] %v865_v35  ;;  %v509_v38 = vpop.f32.mrf.mxu2  ;;  %v622_v39 = vpop.f32.mrf.mxu3 }
 0x124   :  { %v866_v40 = vadd.f32 %v738_v36, %v509_v38  ;;  %v867_v41 = vadd.f32 %v739_v37, %v622_v39  ;;  %v760_v38 = vld [vmem:[#allocation2 + $0x300] sm:$0xff]  ;;  %v761_v39 = vld [vmem:[#allocation2 + $0x308] sm:$0xff] }
 0x126   :  { %994 = vst [vmem:[#allocation5 + $0x250] sm:$0xff] %v866_v40 }
 0x127   :  { %995 = vst [vmem:[#allocation5 + $0x258] sm:$0xff] %v867_v41  ;;  %v286_v44 = vpop.f32.mrf.mxu0  ;;  %v399_v45 = vpop.f32.mrf.mxu1 }
 0x128   :  { %v868_v46 = vadd.f32 %v740_v42, %v286_v44  ;;  %v869_v47 = vadd.f32 %v741_v43, %v399_v45  ;;  %v762_v44 = vld [vmem:[#allocation2 + $0x310] sm:$0xff]  ;;  %v763_v45 = vld [vmem:[#allocation2 + $0x318] sm:$0xff] }
 0x12a   :  { %996 = vst [vmem:[#allocation5 + $0x260] sm:$0xff] %v868_v46 }
 0x12b   :  { %997 = vst [vmem:[#allocation5 + $0x268] sm:$0xff] %v869_v47  ;;  %v512_v50 = vpop.f32.mrf.mxu2  ;;  %v625_v51 = vpop.f32.mrf.mxu3 }
 0x12c   :  { %v870_v52 = vadd.f32 %v742_v48, %v512_v50  ;;  %v871_v53 = vadd.f32 %v743_v49, %v625_v51  ;;  %v764_v50 = vld [vmem:[#allocation2 + $0x320] sm:$0xff]  ;;  %v765_v51 = vld [vmem:[#allocation2 + $0x328] sm:$0xff] }
 0x12e   :  { %998 = vst [vmem:[#allocation5 + $0x270] sm:$0xff] %v870_v52 }
 0x12f   :  { %999 = vst [vmem:[#allocation5 + $0x278] sm:$0xff] %v871_v53  ;;  %v289_v56 = vpop.f32.mrf.mxu0  ;;  %v402_v57 = vpop.f32.mrf.mxu1 }
 0x130   :  { %v872_v58 = vadd.f32 %v744_v54, %v289_v56  ;;  %v873_v59 = vadd.f32 %v745_v55, %v402_v57  ;;  %v766_v56 = vld [vmem:[#allocation2 + $0x330] sm:$0xff]  ;;  %v767_v57 = vld [vmem:[#allocation2 + $0x338] sm:$0xff] }
 0x132   :  { %1000 = vst [vmem:[#allocation5 + $0x280] sm:$0xff] %v872_v58 }
 0x133   :  { %1001 = vst [vmem:[#allocation5 + $0x288] sm:$0xff] %v873_v59  ;;  %v515_v62 = vpop.f32.mrf.mxu2  ;;  %v628_v63 = vpop.f32.mrf.mxu3 }
 0x134   :  { %v874_v0 = vadd.f32 %v746_v60, %v515_v62  ;;  %v875_v1 = vadd.f32 %v747_v61, %v628_v63  ;;  %v768_v62 = vld [vmem:[#allocation2 + $0x340] sm:$0xff]  ;;  %v769_v63 = vld [vmem:[#allocation2 + $0x348] sm:$0xff] }
 0x136   :  { %1002 = vst [vmem:[#allocation5 + $0x290] sm:$0xff] %v874_v0 }
 0x137   :  { %1003 = vst [vmem:[#allocation5 + $0x298] sm:$0xff] %v875_v1  ;;  %v292_v4 = vpop.f32.mrf.mxu0  ;;  %v405_v5 = vpop.f32.mrf.mxu1 }
 0x138   :  { %v876_v6 = vadd.f32 %v748_v2, %v292_v4  ;;  %v877_v7 = vadd.f32 %v749_v3, %v405_v5  ;;  %v770_v4 = vld [vmem:[#allocation2 + $0x350] sm:$0xff]  ;;  %v771_v5 = vld [vmem:[#allocation2 + $0x358] sm:$0xff] }
 0x13a   :  { %1004 = vst [vmem:[#allocation5 + $0x2a0] sm:$0xff] %v876_v6 }
 0x13b   :  { %1005 = vst [vmem:[#allocation5 + $0x2a8] sm:$0xff] %v877_v7  ;;  %v518_v10 = vpop.f32.mrf.mxu2  ;;  %v631_v11 = vpop.f32.mrf.mxu3 }
 0x13c   :  { %v878_v12 = vadd.f32 %v750_v8, %v518_v10  ;;  %v879_v13 = vadd.f32 %v751_v9, %v631_v11  ;;  %v772_v10 = vld [vmem:[#allocation2 + $0x360] sm:$0xff]  ;;  %v773_v11 = vld [vmem:[#allocation2 + $0x368] sm:$0xff] }
 0x13e   :  { %1006 = vst [vmem:[#allocation5 + $0x2b0] sm:$0xff] %v878_v12 }
 0x13f   :  { %1007 = vst [vmem:[#allocation5 + $0x2b8] sm:$0xff] %v879_v13  ;;  %v295_v16 = vpop.f32.mrf.mxu0  ;;  %v408_v17 = vpop.f32.mrf.mxu1 }
 0x140   :  { %v880_v18 = vadd.f32 %v752_v14, %v295_v16  ;;  %v881_v19 = vadd.f32 %v753_v15, %v408_v17  ;;  %v774_v16 = vld [vmem:[#allocation2 + $0x370] sm:$0xff]  ;;  %v775_v17 = vld [vmem:[#allocation2 + $0x378] sm:$0xff] }
 0x142   :  { %1008 = vst [vmem:[#allocation5 + $0x2c0] sm:$0xff] %v880_v18 }
 0x143   :  { %1009 = vst [vmem:[#allocation5 + $0x2c8] sm:$0xff] %v881_v19  ;;  %v521_v22 = vpop.f32.mrf.mxu2  ;;  %v634_v23 = vpop.f32.mrf.mxu3 }
 0x144   :  { %v882_v24 = vadd.f32 %v754_v20, %v521_v22  ;;  %v883_v25 = vadd.f32 %v755_v21, %v634_v23  ;;  %v776_v22 = vld [vmem:[#allocation2 + $0x380] sm:$0xff]  ;;  %v777_v23 = vld [vmem:[#allocation2 + $0x388] sm:$0xff] }
 0x146   :  { %1010 = vst [vmem:[#allocation5 + $0x2d0] sm:$0xff] %v882_v24 }
 0x147   :  { %1011 = vst [vmem:[#allocation5 + $0x2d8] sm:$0xff] %v883_v25  ;;  %v298_v28 = vpop.f32.mrf.mxu0  ;;  %v411_v29 = vpop.f32.mrf.mxu1 }
 0x148   :  { %v884_v30 = vadd.f32 %v756_v26, %v298_v28  ;;  %v885_v31 = vadd.f32 %v757_v27, %v411_v29  ;;  %v778_v28 = vld [vmem:[#allocation2 + $0x390] sm:$0xff]  ;;  %v779_v29 = vld [vmem:[#allocation2 + $0x398] sm:$0xff] }
 0x14a   :  { %1012 = vst [vmem:[#allocation5 + $0x2e0] sm:$0xff] %v884_v30 }
 0x14b   :  { %1013 = vst [vmem:[#allocation5 + $0x2e8] sm:$0xff] %v885_v31  ;;  %v524_v34 = vpop.f32.mrf.mxu2  ;;  %v637_v35 = vpop.f32.mrf.mxu3 }
 0x14c   :  { %v886_v36 = vadd.f32 %v758_v32, %v524_v34  ;;  %v887_v37 = vadd.f32 %v759_v33, %v637_v35  ;;  %v780_v34 = vld [vmem:[#allocation2 + $0x3a0] sm:$0xff]  ;;  %v781_v35 = vld [vmem:[#allocation2 + $0x3a8] sm:$0xff] }
 0x14e   :  { %1014 = vst [vmem:[#allocation5 + $0x2f0] sm:$0xff] %v886_v36 }
 0x14f   :  { %1015 = vst [vmem:[#allocation5 + $0x2f8] sm:$0xff] %v887_v37  ;;  %v301_v40 = vpop.f32.mrf.mxu0  ;;  %v414_v41 = vpop.f32.mrf.mxu1 }
 0x150   :  { %v888_v42 = vadd.f32 %v760_v38, %v301_v40  ;;  %v889_v43 = vadd.f32 %v761_v39, %v414_v41  ;;  %v782_v40 = vld [vmem:[#allocation2 + $0x3b0] sm:$0xff]  ;;  %v783_v41 = vld [vmem:[#allocation2 + $0x3b8] sm:$0xff] }
 0x152   :  { %1016 = vst [vmem:[#allocation5 + $0x300] sm:$0xff] %v888_v42 }
 0x153   :  { %1017 = vst [vmem:[#allocation5 + $0x308] sm:$0xff] %v889_v43  ;;  %v527_v46 = vpop.f32.mrf.mxu2  ;;  %v640_v47 = vpop.f32.mrf.mxu3 }
 0x154   :  { %v890_v48 = vadd.f32 %v762_v44, %v527_v46  ;;  %v891_v49 = vadd.f32 %v763_v45, %v640_v47  ;;  %v784_v46 = vld [vmem:[#allocation2 + $0x3c0] sm:$0xff]  ;;  %v785_v47 = vld [vmem:[#allocation2 + $0x3c8] sm:$0xff] }
 0x156   :  { %1018 = vst [vmem:[#allocation5 + $0x310] sm:$0xff] %v890_v48 }
 0x157   :  { %1019 = vst [vmem:[#allocation5 + $0x318] sm:$0xff] %v891_v49  ;;  %v304_v52 = vpop.f32.mrf.mxu0  ;;  %v417_v53 = vpop.f32.mrf.mxu1 }
 0x158   :  { %v892_v54 = vadd.f32 %v764_v50, %v304_v52  ;;  %v893_v55 = vadd.f32 %v765_v51, %v417_v53  ;;  %v786_v52 = vld [vmem:[#allocation2 + $0x3d0] sm:$0xff]  ;;  %v787_v53 = vld [vmem:[#allocation2 + $0x3d8] sm:$0xff] }
 0x15a   :  { %1020 = vst [vmem:[#allocation5 + $0x320] sm:$0xff] %v892_v54 }
 0x15b   :  { %1021 = vst [vmem:[#allocation5 + $0x328] sm:$0xff] %v893_v55  ;;  %v530_v58 = vpop.f32.mrf.mxu2  ;;  %v643_v59 = vpop.f32.mrf.mxu3 }
 0x15c   :  { %v894_v60 = vadd.f32 %v766_v56, %v530_v58  ;;  %v895_v61 = vadd.f32 %v767_v57, %v643_v59  ;;  %v788_v58 = vld [vmem:[#allocation2 + $0x3e0] sm:$0xff]  ;;  %v789_v59 = vld [vmem:[#allocation2 + $0x3e8] sm:$0xff] }
 0x15e   :  { %1022 = vst [vmem:[#allocation5 + $0x330] sm:$0xff] %v894_v60 }
 0x15f   :  { %1023 = vst [vmem:[#allocation5 + $0x338] sm:$0xff] %v895_v61  ;;  %v307_v0 = vpop.f32.mrf.mxu0  ;;  %v420_v1 = vpop.f32.mrf.mxu1 }
 0x160   :  { %v896_v2 = vadd.f32 %v768_v62, %v307_v0  ;;  %v897_v3 = vadd.f32 %v769_v63, %v420_v1  ;;  %v790_v0 = vld [vmem:[#allocation2 + $0x3f0] sm:$0xff]  ;;  %v791_v1 = vld [vmem:[#allocation2 + $0x3f8] sm:$0xff] }
 0x162   :  { %1024 = vst [vmem:[#allocation5 + $0x340] sm:$0xff] %v896_v2 }
 0x163   :  { %1025 = vst [vmem:[#allocation5 + $0x348] sm:$0xff] %v897_v3  ;;  %v533_v6 = vpop.f32.mrf.mxu2  ;;  %v646_v7 = vpop.f32.mrf.mxu3 }
 0x164   :  { %v898_v8 = vadd.f32 %v770_v4, %v533_v6  ;;  %v899_v9 = vadd.f32 %v771_v5, %v646_v7 }
 0x166   :  { %1026 = vst [vmem:[#allocation5 + $0x350] sm:$0xff] %v898_v8 }
 0x167   :  { %1027 = vst [vmem:[#allocation5 + $0x358] sm:$0xff] %v899_v9  ;;  %v310_v12 = vpop.f32.mrf.mxu0  ;;  %v423_v13 = vpop.f32.mrf.mxu1 }
 0x168   :  { %v900_v14 = vadd.f32 %v772_v10, %v310_v12  ;;  %v901_v15 = vadd.f32 %v773_v11, %v423_v13 }
 0x16a   :  { %1028 = vst [vmem:[#allocation5 + $0x360] sm:$0xff] %v900_v14 }
 0x16b   :  { %1029 = vst [vmem:[#allocation5 + $0x368] sm:$0xff] %v901_v15  ;;  %v536_v18 = vpop.f32.mrf.mxu2  ;;  %v649_v19 = vpop.f32.mrf.mxu3 }
 0x16c   :  { %v902_v20 = vadd.f32 %v774_v16, %v536_v18  ;;  %v903_v21 = vadd.f32 %v775_v17, %v649_v19 }
 0x16e   :  { %1030 = vst [vmem:[#allocation5 + $0x370] sm:$0xff] %v902_v20 }
 0x16f   :  { %1031 = vst [vmem:[#allocation5 + $0x378] sm:$0xff] %v903_v21  ;;  %v313_v24 = vpop.f32.mrf.mxu0  ;;  %v426_v25 = vpop.f32.mrf.mxu1 }
 0x170   :  { %v904_v26 = vadd.f32 %v776_v22, %v313_v24  ;;  %v905_v27 = vadd.f32 %v777_v23, %v426_v25 }
 0x172   :  { %1032 = vst [vmem:[#allocation5 + $0x380] sm:$0xff] %v904_v26 }
 0x173   :  { %1033 = vst [vmem:[#allocation5 + $0x388] sm:$0xff] %v905_v27  ;;  %v539_v30 = vpop.f32.mrf.mxu2  ;;  %v652_v31 = vpop.f32.mrf.mxu3 }
 0x174   :  { %v906_v32 = vadd.f32 %v778_v28, %v539_v30  ;;  %v907_v33 = vadd.f32 %v779_v29, %v652_v31 }
 0x176   :  { %1034 = vst [vmem:[#allocation5 + $0x390] sm:$0xff] %v906_v32 }
 0x177   :  { %1035 = vst [vmem:[#allocation5 + $0x398] sm:$0xff] %v907_v33  ;;  %v316_v36 = vpop.f32.mrf.mxu0  ;;  %v429_v37 = vpop.f32.mrf.mxu1 }
 0x178   :  { %v908_v38 = vadd.f32 %v780_v34, %v316_v36  ;;  %v909_v39 = vadd.f32 %v781_v35, %v429_v37 }
 0x17a   :  { %1036 = vst [vmem:[#allocation5 + $0x3a0] sm:$0xff] %v908_v38 }
 0x17b   :  { %1037 = vst [vmem:[#allocation5 + $0x3a8] sm:$0xff] %v909_v39  ;;  %v542_v42 = vpop.f32.mrf.mxu2  ;;  %v655_v43 = vpop.f32.mrf.mxu3 }
 0x17c   :  { %v910_v44 = vadd.f32 %v782_v40, %v542_v42  ;;  %v911_v45 = vadd.f32 %v783_v41, %v655_v43 }
 0x17e   :  { %1038 = vst [vmem:[#allocation5 + $0x3b0] sm:$0xff] %v910_v44 }
 0x17f   :  { %1039 = vst [vmem:[#allocation5 + $0x3b8] sm:$0xff] %v911_v45  ;;  %v319_v48 = vpop.f32.mrf.mxu0  ;;  %v432_v49 = vpop.f32.mrf.mxu1 }
 0x180   :  { %v912_v50 = vadd.f32 %v784_v46, %v319_v48  ;;  %v913_v51 = vadd.f32 %v785_v47, %v432_v49 }
 0x182   :  { %1040 = vst [vmem:[#allocation5 + $0x3c0] sm:$0xff] %v912_v50 }
 0x183   :  { %1041 = vst [vmem:[#allocation5 + $0x3c8] sm:$0xff] %v913_v51  ;;  %v545_v54 = vpop.f32.mrf.mxu2  ;;  %v658_v55 = vpop.f32.mrf.mxu3 }
 0x184   :  { %v914_v56 = vadd.f32 %v786_v52, %v545_v54  ;;  %v915_v57 = vadd.f32 %v787_v53, %v658_v55 }
 0x186   :  { %1042 = vst [vmem:[#allocation5 + $0x3d0] sm:$0xff] %v914_v56 }
 0x187   :  { %1043 = vst [vmem:[#allocation5 + $0x3d8] sm:$0xff] %v915_v57  ;;  %v322_v60 = vpop.f32.mrf.mxu0  ;;  %v435_v61 = vpop.f32.mrf.mxu1 }
 0x188   :  { %v916_v62 = vadd.f32 %v788_v58, %v322_v60  ;;  %v917_v63 = vadd.f32 %v789_v59, %v435_v61 }
 0x18a   :  { %1044 = vst [vmem:[#allocation5 + $0x3e0] sm:$0xff] %v916_v62 }
 0x18b   :  { %1045 = vst [vmem:[#allocation5 + $0x3e8] sm:$0xff] %v917_v63  ;;  %v548_v2 = vpop.f32.mrf.mxu2  ;;  %v661_v3 = vpop.f32.mrf.mxu3 }
 0x18c   :  { %v918_v4 = vadd.f32 %v790_v0, %v548_v2  ;;  %v919_v5 = vadd.f32 %v791_v1, %v661_v3 }
 0x18e   :  { %1046 = vst [vmem:[#allocation5 + $0x3f0] sm:$0xff] %v918_v4 }
 0x18f   :  { %1047 = vst [vmem:[#allocation5 + $0x3f8] sm:$0xff] %v919_v5 }
 0x190   :  { %1060 = dma.vmem_to_hbm [thread:$0]  %s1053_s4, 16384, %s1055_s7, [#allocation4], %s1256_s17, %s1256_s17, %s1257_s18  }
 0x191   :  { %1253 = dma.done.wait [#allocation4], 16384  }
 0x192   :  { %1254 = vsyncadd [#allocation4], 4294950912 }
 0x193   :  { %1065 = vsyncpa [#allocation3], 1 }
 0x194   :  { %1066 = vsyncpa [#allocation4], 1 }

</bundles_post_ra>
